<compile_context>
chip_gen: v5e
topology: v5e:2x2
jax: 0.10.0
libtpu: 0.0.40
codegen_flags: <defaults>
</compile_context>

<pallas_src>
import math

import jax
import jax.numpy as jnp
from jax.experimental import pallas as pl
from jax.experimental.pallas import tpu as pltpu


def _copy_kernel(x_ref, o_ref):
    # Identity copy of one (tile_r, tile_c) tile resident in VMEM.
    o_ref[...] = x_ref[...]


_LANE = 128
_MAX_TILE_BYTES = 4 * 1024 * 1024   # 4 MiB / buffer; x2 double-buffer x (in+out) ~= 16 MiB
_VMEM_LIMIT = 32 << 20              # explicit scoped-VMEM budget (safe on v5e/v6e/v7x)


def _sublane_unit(dtype):
    # Sublane packing: f32 -> 8, bf16/f16 -> 16, int8/fp8 -> 32.
    itemsize = jnp.dtype(dtype).itemsize
    return {4: 8, 2: 16, 1: 32}.get(itemsize, 8)


def _choose_rows(rows, unit, cap_rows):
    """Row-block extent: full dim if it fits, else a unit-aligned tile.

    A block extent equal to the full array dim is always legal; otherwise it
    must be sublane-aligned (Pallas masks partial edge blocks)."""
    if rows <= cap_rows:
        return rows
    return max((cap_rows // unit) * unit, unit)


def _pallas_copy_2d(x2d, tile_r, tile_c):
    """Tiled identity copy of a 2-D array through VMEM (HBM-BW bound)."""
    r, c = x2d.shape
    nbytes = int(x2d.size) * jnp.dtype(x2d.dtype).itemsize
    grid = (pl.cdiv(r, tile_r), pl.cdiv(c, tile_c))
    return pl.pallas_call(
        _copy_kernel,
        out_shape=jax.ShapeDtypeStruct((r, c), x2d.dtype),
        grid=grid,
        in_specs=[pl.BlockSpec((tile_r, tile_c), lambda i, j: (i, j))],
        out_specs=pl.BlockSpec((tile_r, tile_c), lambda i, j: (i, j)),
        compiler_params=pltpu.CompilerParams(
            dimension_semantics=("parallel", "parallel"),
            vmem_limit_bytes=_VMEM_LIMIT),
        cost_estimate=pl.CostEstimate(
            flops=0, transcendentals=0, bytes_accessed=2 * nbytes),
    )(x2d)


def unflatten(x, *, materialize=False):
    """Equivalent of torch `x.view(x.shape[0], -1, 1, 1)`.

    Default path (materialize=False): metadata-only reshape — the op is a
    pure view, so no kernel and no HBM traffic.  This is the recommended
    usage.

    materialize=True: produce a fresh output buffer via a Pallas copy kernel
    (lane-dense tiling).  The input x is NOT donated / aliased, so it stays
    valid after the call, matching torch.view semantics.
    """
    b = x.shape[0]
    d = int(math.prod(x.shape[1:]))
    total = b * d
    itemsize = jnp.dtype(x.dtype).itemsize

    # Fast path: pure metadata.  Covers the normal case (view) and degenerate
    # empty inputs.
    if not materialize or total == 0:
        return x.reshape(b, d, 1, 1)

    unit = _sublane_unit(x.dtype)

    # Prefer a lane-dense slab: flatten (metadata only) and fold into
    # (rows, L) with L a multiple of 128 so output stores are unmasked vst.
    lane_w = None
    for cand in (2048, 1024, 512, 256, 128):
        if total % cand == 0:
            lane_w = cand
            break

    if lane_w is not None:
        rows = total // lane_w
        cap_rows = max(_MAX_TILE_BYTES // (lane_w * itemsize), unit)
        tile_r = _choose_rows(rows, unit, cap_rows)
        out = _pallas_copy_2d(x.reshape(rows, lane_w), tile_r, lane_w)
    else:
        # Fallback for totals not divisible by 128: tile the raw (B, D).
        # Edge blocks are masked (vst.msk) but correct.
        x2d = x.reshape(b, d)
        tile_d = d if d <= 2048 else 2048
        cap_b = max(_MAX_TILE_BYTES // (tile_d * itemsize), unit)
        tile_b = _choose_rows(b, unit, cap_b)
        out = _pallas_copy_2d(x2d, tile_b, tile_d)

    # glue: attach the (1, 1) spatial dims -> NCHW (B, D, 1, 1)
    return out.reshape(b, d, 1, 1)


if __name__ == "__main__":
    key = jax.random.PRNGKey(0)
    # Small shape consistent with the VAE usage: a flat latent/feature vector
    # per batch element, e.g. (batch=2, features=256).
    shape = (2, 256)
    x = jax.random.normal(key, shape, dtype=jnp.float32)

    # Default path: metadata-only reshape (the op is a pure view).
    y_view = unflatten(x)
    # Pallas path: materialized copy — exercises the kernel once.
    y_kern = unflatten(x, materialize=True)
    jax.block_until_ready((y_view, y_kern))

    # Sanity checks against the reference semantics of x.view(B, -1, 1, 1).
    assert y_view.shape == (2, 256, 1, 1), y_view.shape
    assert y_kern.shape == (2, 256, 1, 1), y_kern.shape
    assert y_kern.dtype == x.dtype
    assert jnp.array_equal(y_view, y_kern)
    # No donation / aliasing: x is still valid after the call (view semantics).
    assert jnp.array_equal(y_kern.reshape(shape), x)

    print("KERNEL_OK")
</pallas_src>

<mosaic_0001>
module attributes {stable_mosaic.version = 11 : i64} {
  func.func @_copy_kernel(%arg0: i32, %arg1: i32, %arg2: memref<1x512xf32, #tpu.memory_space<vmem>>, %arg3: memref<1x512xf32, #tpu.memory_space<vmem>>) attributes {dimension_semantics = [#tpu.dimension_semantics<parallel>, #tpu.dimension_semantics<parallel>], iteration_bounds = array<i64: 1, 1>, scalar_prefetch = 0 : i64, scratch_operands = 0 : i64, tpu.core_type = #tpu.core_type<tc>, window_params = [{transform_indices = @transform_0, window_bounds = array<i64: 1, 512>}, {transform_indices = @transform_1, window_bounds = array<i64: 1, 512>}]} {
    %c0 = arith.constant 0 : index
    %c0_0 = arith.constant 0 : index
    %0 = vector.load %arg2[%c0, %c0_0] : memref<1x512xf32, #tpu.memory_space<vmem>>, vector<1x512xf32>
    %c0_1 = arith.constant 0 : index
    %c0_2 = arith.constant 0 : index
    %1 = vector.load %arg3[%c0_1, %c0_2] : memref<1x512xf32, #tpu.memory_space<vmem>>, vector<1x512xf32>
    tpu.vector_store %arg3[%c0_1, %c0_2], %0 {strides = array<i32>} : memref<1x512xf32, #tpu.memory_space<vmem>>, vector<1x512xf32>,
    return
  }
  func.func @transform_0(%arg0: i32, %arg1: i32) -> (i32, i32) {
    %c0_i32 = arith.constant 0 : i32
    return %arg0, %arg1 : i32, i32
  }
  func.func @transform_1(%arg0: i32, %arg1: i32) -> (i32, i32) {
    %c0_i32 = arith.constant 0 : i32
    return %arg0, %arg1 : i32, i32
  }
}

</mosaic_0001>

<bundles_post_ra>
// kernel: tpu_custom_call.1
= control target key start
LH: loop header
LB: loop body
LE: loop exit
PB: predicated region body
PF: predicated region fallthrough
CT: control target
= control target key end

     0   :  { %6 = vsyncpa [#allocation3], 0  ;;  %s118_s0 = inlined_call_operand.hbm [shape: f32[1,512], index: 0, kind: input, shape index: {}]   ;;  %s119_s1 = inlined_call_operand.hbm [shape: f32[1,512], index: 1, kind: output, shape index: {}]  }
   0x1   :  { %7 = vsyncpa [#allocation4], 0  ;;  %s13_s8 = sshll.u32 %s118_s0, 4  ;;  %s100_s9 = smov [#allocation2]   ;;  %s14_s8 = int_to_ptr.hbm [resolvable:$true] %s13_s8 }
   0x2   :  { %s15_s10 = sshll.u32 %s100_s9, 4  ;;  %s16_s10 = int_to_ptr.vmem [resolvable:$true] %s15_s10 }
   0x3   :  { %18 = dma.hbm_to_vmem [thread:$0]  %s14_s8, 64, %s16_s10, [#allocation3]  }
   0x4   :  { %96 = dma.done.wait [#allocation3], 64  }
   0x5   :  { %97 = vsyncadd [#allocation3], 4294967232  ;;  %v24_v0 = vlaneseq  ;;  %s101_s11 = smov [#allocation5]   ;;  %s36_s15 = sshll.u32 %s119_s1, 4  ;;  %v23_v1 = vld [vmem:[#allocation2] sm:$0xf]  ;;  %s37_s15 = int_to_ptr.hbm [resolvable:$true] %s36_s15 }
   0x6   :  { %s34_s12 = sshll.u32 %s101_s11, 4  ;;  %s35_s12 = int_to_ptr.vmem [resolvable:$true] %s34_s12 }
   0x7   :  { %vm26_vm0 = vcmp.lt.s32.totalorder %v24_v0, 512 }
   0x8   :  { %28 = vst.msk [vmem:[#allocation5] sm:$0xf] %vm26_vm0, %v23_v1 }
   0x9   :  { %39 = dma.vmem_to_hbm [thread:$0]  %s35_s12, 64, %s37_s15, [#allocation4]  }
   0xa   :  { %98 = dma.done.wait [#allocation4], 64  }
   0xb   :  { %99 = vsyncadd [#allocation4], 4294967232 }
   0xc   :  { %44 = vsyncpa [#allocation3], 1 }
   0xd   :  { %45 = vsyncpa [#allocation4], 1 }

</bundles_post_ra>
